<compile_context>
chip_gen: v6e
topology: v6e:2x2x1
jax: 0.10.0
libtpu: 0.0.40
codegen_flags: <defaults>
</compile_context>

<pallas_src>
import functools
import math

import jax
import jax.numpy as jnp
from jax.experimental import pallas as pl
from jax.experimental.pallas import tpu as pltpu

LANE = 128  # TPU lane width


def _round_up(n, m):
    return ((n + m - 1) // m) * m


def _dueling_kernel(x_ref, w1_ref, w2_ref, w3_ref, b_ref, o_ref, *,
                    h1c, h2c, p, off2, off3, inv_adv_count):
    w_dtype = w1_ref.dtype
    x = x_ref[...]

    # Static, lane-aligned slices of the packed bias array (f32).
    b1 = b_ref[:, 0:h1c]
    b2 = b_ref[:, off2:off2 + h2c]
    b3 = b_ref[:, off3:off3 + p]

    y = jnp.dot(x.astype(w_dtype), w1_ref[...],
                preferred_element_type=jnp.float32) + b1
    y = jnp.maximum(y, 0.0)
    y = jnp.dot(y.astype(w_dtype), w2_ref[...],
                preferred_element_type=jnp.float32) + b2
    y = jnp.maximum(y, 0.0)
    out3 = jnp.dot(y.astype(w_dtype), w3_ref[...],
                   preferred_element_type=jnp.float32) + b3

    # out3[:, j < A] = val + adv_j ; out3[:, j >= A] = val (padded advantage
    # columns contribute exact zeros).  Recover the GLOBAL adv mean:
    total = jnp.sum(out3)                         # = P * sum(val) + sum(adv)
    val_sum = jnp.sum(out3[:, p - 1:p])           # last column is always padded
    adv_mean = (total - p * val_sum) * inv_adv_count

    o_ref[...] = (out3 - adv_mean).astype(o_ref.dtype)


def prepare_params(params, action_size, param_dtype=jnp.float32):
    """One-time packing of the six nn.Linear layers into 3 fused weights and a
    single lane-aligned bias array (hoisted out of the per-call forward path).
    Weights may be cast to bf16; biases are kept in f32."""
    w1v, w1a = params["w1v"], params["w1a"]
    w2v, w2a = params["w2v"], params["w2a"]
    w3v, w3a = params["w3v"], params["w3a"]
    S, H1 = w1v.shape
    H2 = w2v.shape[1]
    A = action_size
    # Always leave >= 1 padded (value-only) output column for the mean trick.
    P = _round_up(A + 1, LANE)
    H1C, H2C = 2 * H1, 2 * H2

    # Layer 1: shared LHS, concatenated outputs.
    W1 = jnp.concatenate([w1v, w1a], axis=1)                        # (S, 2*H1)
    # Layer 2: block-diagonal.
    W2 = jnp.zeros((H1C, H2C), jnp.float32)
    W2 = W2.at[:H1, :H2].set(w2v).at[H1:, H2:].set(w2a)             # (2H1, 2H2)
    # Layer 3: value column replicated across all lanes, advantage zero-padded.
    W3 = jnp.zeros((H2C, P), jnp.float32)
    W3 = W3.at[:H2, :].set(jnp.broadcast_to(w3v, (H2, P)))
    W3 = W3.at[H2:, :A].set(w3a)                                    # (2H2, P)

    b1 = jnp.concatenate([params["b1v"], params["b1a"]]).reshape(1, H1C)
    b2 = jnp.concatenate([params["b2v"], params["b2a"]]).reshape(1, H2C)
    b3 = jnp.broadcast_to(params["b3v"].reshape(1, 1), (1, P)).astype(jnp.float32)
    b3 = b3.at[:, :A].add(params["b3a"].reshape(1, A))

    off2 = _round_up(H1C, LANE)
    off3 = off2 + _round_up(H2C, LANE)
    tot = off3 + P
    biases = jnp.zeros((1, tot), jnp.float32)
    biases = biases.at[:, 0:H1C].set(b1)
    biases = biases.at[:, off2:off2 + H2C].set(b2)
    biases = biases.at[:, off3:off3 + P].set(b3)

    return dict(W1=W1.astype(param_dtype), W2=W2.astype(param_dtype),
                W3=W3.astype(param_dtype), b=biases)


@functools.partial(jax.jit, static_argnames=("action_size",))
def dueling_q_forward(x, prep, *, action_size):
    B, S = x.shape
    W1, W2, W3, biases = prep["W1"], prep["W2"], prep["W3"], prep["b"]
    H1C = W1.shape[1]
    H2C = W2.shape[1]
    P = W3.shape[1]
    OFF2 = _round_up(H1C, LANE)
    OFF3 = OFF2 + _round_up(H2C, LANE)
    TOT = biases.shape[1]

    full = lambda shape: pl.BlockSpec(shape, lambda: (0,) * len(shape))

    flops = 2 * B * (S * H1C + H1C * H2C + H2C * P)
    bytes_accessed = int(x.size) * x.dtype.itemsize + B * P * 4
    for a in (W1, W2, W3, biases):
        bytes_accessed += int(a.size) * a.dtype.itemsize

    q_padded = pl.pallas_call(
        functools.partial(_dueling_kernel, h1c=H1C, h2c=H2C, p=P,
                          off2=OFF2, off3=OFF3,
                          inv_adv_count=1.0 / float(B * action_size)),
        out_shape=jax.ShapeDtypeStruct((B, P), jnp.float32),
        grid_spec=pltpu.PrefetchScalarGridSpec(
            num_scalar_prefetch=0,
            grid=(),
            in_specs=[
                full((B, S)),        # x
                full((S, H1C)),      # W1  [w1v | w1a]
                full((H1C, H2C)),    # W2  blockdiag(w2v, w2a)
                full((H2C, P)),      # W3  [w3v bcast ; w3a zero-pad]
                full((1, TOT)),      # packed biases (f32)
            ],
            out_specs=full((B, P)),
        ),
        cost_estimate=pl.CostEstimate(flops=int(flops), transcendentals=0,
                                      bytes_accessed=int(bytes_accessed)),
    )(x, W1, W2, W3, biases)

    return q_padded[:, :action_size]


# ----------------------------------------------------------------------------
# Parameter construction (weights stored pre-transposed as (in, out), i.e.
# torch_linear.weight.T) and a pure-JAX reference for correctness checking.
# ----------------------------------------------------------------------------
def make_params(key, state_size, action_size, hidsize1=128, hidsize2=128):
    def linear(k, fan_in, fan_out):
        kw, kb = jax.random.split(k)
        bound = 1.0 / math.sqrt(fan_in)  # nn.Linear default init
        w = jax.random.uniform(kw, (fan_in, fan_out), minval=-bound,
                               maxval=bound, dtype=jnp.float32)
        b = jax.random.uniform(kb, (fan_out,), minval=-bound,
                               maxval=bound, dtype=jnp.float32)
        return w, b

    ks = jax.random.split(key, 6)
    w1v, b1v = linear(ks[0], state_size, hidsize1)
    w2v, b2v = linear(ks[1], hidsize1, hidsize2)
    w3v, b3v = linear(ks[2], hidsize2, 1)
    w1a, b1a = linear(ks[3], state_size, hidsize1)
    w2a, b2a = linear(ks[4], hidsize1, hidsize2)
    w3a, b3a = linear(ks[5], hidsize2, action_size)
    return dict(w1v=w1v, b1v=b1v, w2v=w2v, b2v=b2v, w3v=w3v, b3v=b3v,
                w1a=w1a, b1a=b1a, w2a=w2a, b2a=b2a, w3a=w3a, b3a=b3a)


def ref_forward(x, p):
    hi = jax.lax.Precision.HIGHEST
    dot = lambda a, b: jnp.dot(a, b, precision=hi)
    val = jax.nn.relu(dot(x, p["w1v"]) + p["b1v"])
    val = jax.nn.relu(dot(val, p["w2v"]) + p["b2v"])
    val = dot(val, p["w3v"]) + p["b3v"]                 # (B, 1)
    adv = jax.nn.relu(dot(x, p["w1a"]) + p["b1a"])
    adv = jax.nn.relu(dot(adv, p["w2a"]) + p["b2a"])
    adv = dot(adv, p["w3a"]) + p["b3a"]                 # (B, A)
    return val + adv - adv.mean()                       # GLOBAL mean, like torch


if __name__ == "__main__":
    key = jax.random.PRNGKey(0)
    k_x, k_p = jax.random.split(key)

    B, state_size, action_size = 8, 128, 5
    hidsize1 = hidsize2 = 128

    x = jax.random.normal(k_x, (B, state_size), dtype=jnp.float32)
    params = make_params(k_p, state_size, action_size, hidsize1, hidsize2)
    ref = ref_forward(x, params)

    # f32 weights: tight check against the high-precision reference.
    prep_f32 = prepare_params(params, action_size, jnp.float32)
    out = jax.block_until_ready(
        dueling_q_forward(x, prep_f32, action_size=action_size))
    assert out.shape == (B, action_size), out.shape
    assert jnp.allclose(out, ref, atol=1e-3, rtol=1e-3), \
        float(jnp.max(jnp.abs(out - ref)))

    # bf16 weights (f32 accumulation): the high-throughput configuration.
    prep_bf16 = prepare_params(params, action_size, jnp.bfloat16)
    out_bf16 = jax.block_until_ready(
        dueling_q_forward(x, prep_bf16, action_size=action_size))
    assert out_bf16.shape == (B, action_size), out_bf16.shape
    assert jnp.allclose(out_bf16, ref, atol=1e-1, rtol=1e-1), \
        float(jnp.max(jnp.abs(out_bf16 - ref)))

    print("KERNEL_OK")
</pallas_src>

<mosaic_0001>
module attributes {stable_mosaic.version = 11 : i64} {
  func.func @_dueling_kernel(%arg0: memref<8x128xf32, #tpu.memory_space<vmem>>, %arg1: memref<128x256xf32, #tpu.memory_space<vmem>>, %arg2: memref<256x256xf32, #tpu.memory_space<vmem>>, %arg3: memref<256x128xf32, #tpu.memory_space<vmem>>, %arg4: memref<1x640xf32, #tpu.memory_space<vmem>>, %arg5: memref<8x128xf32, #tpu.memory_space<vmem>>) attributes {dimension_semantics = [], scalar_prefetch = 0 : i64, scratch_operands = 0 : i64, tpu.core_type = #tpu.core_type<tc>} {
    %c0 = arith.constant 0 : index
    %c0_0 = arith.constant 0 : index
    %0 = vector.load %arg0[%c0, %c0_0] : memref<8x128xf32, #tpu.memory_space<vmem>>, vector<8x128xf32>
    %c0_1 = arith.constant 0 : index
    %c0_2 = arith.constant 0 : index
    %1 = vector.load %arg4[%c0_1, %c0_2] : memref<1x640xf32, #tpu.memory_space<vmem>>, vector<1x256xf32>
    %c0_3 = arith.constant 0 : index
    %c256 = arith.constant 256 : index
    %2 = vector.load %arg4[%c0_3, %c256] : memref<1x640xf32, #tpu.memory_space<vmem>>, vector<1x256xf32>
    %c0_4 = arith.constant 0 : index
    %c512 = arith.constant 512 : index
    %3 = vector.load %arg4[%c0_4, %c512] : memref<1x640xf32, #tpu.memory_space<vmem>>, vector<1x128xf32>
    %c0_5 = arith.constant 0 : index
    %c0_6 = arith.constant 0 : index
    %4 = vector.load %arg1[%c0_5, %c0_6] : memref<128x256xf32, #tpu.memory_space<vmem>>, vector<128x256xf32>
    %cst = arith.constant dense<0.000000e+00> : vector<8x256xf32>
    %5 = tpu.matmul %0, %4, %cst {dimension_numbers = #tpu.dot_dimension_numbers<[1], [0], [0], [1], [0, 0, 1, 1], [], []>} : vector<8x128xf32>, vector<128x256xf32>, vector<8x256xf32> -> vector<8x256xf32>
    %6 = vector.broadcast %1 : vector<1x256xf32> to vector<8x256xf32>
    %7 = arith.addf %5, %6 : vector<8x256xf32>
    %cst_7 = arith.constant 0.000000e+00 : f32
    %8 = vector.broadcast %cst_7 : f32 to vector<8x256xf32>
    %9 = arith.maximumf %7, %8 : vector<8x256xf32>
    %c0_8 = arith.constant 0 : index
    %c0_9 = arith.constant 0 : index
    %10 = vector.load %arg2[%c0_8, %c0_9] : memref<256x256xf32, #tpu.memory_space<vmem>>, vector<256x256xf32>
    %cst_10 = arith.constant dense<0.000000e+00> : vector<8x256xf32>
    %11 = tpu.matmul %9, %10, %cst_10 {dimension_numbers = #tpu.dot_dimension_numbers<[1], [0], [0], [1], [0, 0, 1, 1], [], []>} : vector<8x256xf32>, vector<256x256xf32>, vector<8x256xf32> -> vector<8x256xf32>
    %12 = vector.broadcast %2 : vector<1x256xf32> to vector<8x256xf32>
    %13 = arith.addf %11, %12 : vector<8x256xf32>
    %cst_11 = arith.constant 0.000000e+00 : f32
    %14 = vector.broadcast %cst_11 : f32 to vector<8x256xf32>
    %15 = arith.maximumf %13, %14 : vector<8x256xf32>
    %c0_12 = arith.constant 0 : index
    %c0_13 = arith.constant 0 : index
    %16 = vector.load %arg3[%c0_12, %c0_13] : memref<256x128xf32, #tpu.memory_space<vmem>>, vector<256x128xf32>
    %cst_14 = arith.constant dense<0.000000e+00> : vector<8x128xf32>
    %17 = tpu.matmul %15, %16, %cst_14 {dimension_numbers = #tpu.dot_dimension_numbers<[1], [0], [0], [1], [0, 0, 1, 1], [], []>} : vector<8x256xf32>, vector<256x128xf32>, vector<8x128xf32> -> vector<8x128xf32>
    %18 = vector.broadcast %3 : vector<1x128xf32> to vector<8x128xf32>
    %19 = arith.addf %17, %18 : vector<8x128xf32>
    %20 = vector.shape_cast %19 : vector<8x128xf32> to vector<1x8x128xf32>
    %cst_15 = arith.constant dense<0.000000e+00> : vector<1xf32>
    %21 = vector.multi_reduction <add>, %20, %cst_15 [1, 2] : vector<1x8x128xf32> to vector<1xf32>
    %22 = vector.shape_cast %21 : vector<1xf32> to vector<1x1x1xf32>
    %23 = vector.extract %22[0, 0, 0] : f32 from vector<1x1x1xf32>
    %24 = vector.extract_strided_slice %19 {offsets = [0, 127], sizes = [8, 1], strides = [1, 1]} : vector<8x128xf32> to vector<8x1xf32>
    %25 = vector.shape_cast %24 : vector<8x1xf32> to vector<1x8x1xf32>
    %cst_16 = arith.constant dense<0.000000e+00> : vector<1xf32>
    %26 = vector.multi_reduction <add>, %25, %cst_16 [1, 2] : vector<1x8x1xf32> to vector<1xf32>
    %27 = vector.shape_cast %26 : vector<1xf32> to vector<1x1x1xf32>
    %28 = vector.extract %27[0, 0, 0] : f32 from vector<1x1x1xf32>
    %cst_17 = arith.constant 1.280000e+02 : f32
    %29 = arith.mulf %cst_17, %28 : f32
    %30 = arith.subf %23, %29 : f32
    %cst_18 = arith.constant 2.500000e-02 : f32
    %31 = arith.mulf %30, %cst_18 : f32
    %32 = vector.broadcast %31 : f32 to vector<8x128xf32>
    %33 = arith.subf %19, %32 : vector<8x128xf32>
    %c0_19 = arith.constant 0 : index
    %c0_20 = arith.constant 0 : index
    %34 = vector.load %arg5[%c0_19, %c0_20] : memref<8x128xf32, #tpu.memory_space<vmem>>, vector<8x128xf32>
    tpu.vector_store %arg5[%c0_19, %c0_20], %33 {strides = array<i32>} : memref<8x128xf32, #tpu.memory_space<vmem>>, vector<8x128xf32>,
    return
  }
}

</mosaic_0001>

<bundles_post_ra>
// kernel: dueling_q_forward.1
= control target key start
LH: loop header
LB: loop body
LE: loop exit
PB: predicated region body
PF: predicated region fallthrough
CT: control target
= control target key end

     0   :  { %10 = vsyncpa [#allocation3], 0  ;;  %s721_s0 = inlined_call_operand.hbm [shape: f32[8,128], index: 0, kind: input, shape index: {}]   ;;  %s722_s1 = inlined_call_operand.hbm [shape: f32[128,256], index: 1, kind: input, shape index: {}]   ;;  %s723_s2 = inlined_call_operand.hbm [shape: f32[256,256], index: 2, kind: input, shape index: {}]   ;;  %s724_s3 = inlined_call_operand.hbm [shape: f32[256,128], index: 3, kind: input, shape index: {}]   ;;  %s725_s4 = inlined_call_operand.vmem [shape: f32[1,640], index: 4, kind: input, shape index: {}]   ;;  %s726_s5 = inlined_call_operand.hbm [shape: f32[8,128], index: 5, kind: output, shape index: {}]  }
   0x1   :  { %11 = vsyncpa [#allocation6], 0 }
   0x2   :  { %12 = vsyncpa [#allocation9], 0 }
   0x3   :  { %13 = vsyncpa [#allocation4], 0  ;;  %s656_s18 = smov [#allocation5]  }
   0x4   :  { %s29_s19 = sshll.u32 %s656_s18, 4  ;;  %s30_s19 = int_to_ptr.vmem [resolvable:$true] %s29_s19 }
   0x5   :  { %s556_s20 = scalar_lea.vmem %s30_s19, 4096  ;;  %p561_p1 = scmp.lt.s32.totalorder %s30_s19, %s30_s19 }
   0x6   :  { %p557_p0 = scmp.ne.s32.totalorder %s30_s19, %s556_s20  ;;  %p562_p2 = scmp.lt.s32.totalorder %s556_s20, %s556_s20 }
   0x8   :  { %p563_p3 = por %p562_p2, %p561_p1 }
   0xa   :  { %p564_p4 = pnand %p563_p3, %p557_p0 }
   0xc   :  { %567 = shalt.err (!%p564_p4)
}
   0xd   :  { %s657_s21 = smov 256   ;;  %s658_s22 = smov 16  }
   0xe   :  { %35 = dma.hbm_to_vmem [thread:$0]  %s722_s1, 4096, %s30_s19, [#allocation6], %s657_s21, %s657_s21, %s658_s22  }
   0xf   :  { %s659_s25 = smov [#allocation2]   ;;  %s660_s27 = smov [#allocation7]  }
  0x10   :  { %s20_s26 = sshll.u32 %s659_s25, 4  ;;  %s41_s28 = sshll.u32 %s660_s27, 4  ;;  %s21_s26 = int_to_ptr.vmem [resolvable:$true] %s20_s26  ;;  %s42_s28 = int_to_ptr.vmem [resolvable:$true] %s41_s28 }
  0x11   :  { %s576_s29 = scalar_lea.vmem %s21_s26, 128  ;;  %p581_p6 = scmp.lt.s32.totalorder %s21_s26, %s21_s26 }
  0x12   :  { %p577_p5 = scmp.ne.s32.totalorder %s21_s26, %s576_s29  ;;  %p582_p7 = scmp.lt.s32.totalorder %s576_s29, %s576_s29 }
  0x14   :  { %p583_p8 = por %p582_p7, %p581_p6 }
  0x16   :  { %p584_p9 = pnand %p583_p8, %p577_p5 }
  0x18   :  { %587 = shalt.err (!%p584_p9)
}
  0x19   :  { %23 = dma.hbm_to_vmem [thread:$0]  %s721_s0, 128, %s21_s26, [#allocation3]  }
  0x1a   :  { %s596_s7 = scalar_lea.vmem %s42_s28, 8192  ;;  %p601_p11 = scmp.lt.s32.totalorder %s42_s28, %s42_s28 }
  0x1b   :  { %p597_p10 = scmp.ne.s32.totalorder %s42_s28, %s596_s7  ;;  %p602_p12 = scmp.lt.s32.totalorder %s596_s7, %s596_s7 }
  0x1d   :  { %p603_p13 = por %p602_p12, %p601_p11 }
  0x1f   :  { %p604_p0 = pnand %p603_p13, %p597_p10 }
  0x21   :  { %607 = shalt.err (!%p604_p0)
}
  0x22   :  { %47 = dma.hbm_to_vmem [thread:$0]  %s723_s2, 8192, %s42_s28, [#allocation6], %s657_s21, %s657_s21, %s658_s22  }
  0x23   :  { %s661_s9 = smov [#allocation8]  }
  0x24   :  { %s53_s10 = sshll.u32 %s661_s9, 4  ;;  %s54_s10 = int_to_ptr.vmem [resolvable:$true] %s53_s10 }
  0x25   :  { %s616_s11 = scalar_lea.vmem %s54_s10, 4096  ;;  %p621_p2 = scmp.lt.s32.totalorder %s54_s10, %s54_s10 }
  0x26   :  { %p617_p1 = scmp.ne.s32.totalorder %s54_s10, %s616_s11  ;;  %p622_p3 = scmp.lt.s32.totalorder %s616_s11, %s616_s11 }
  0x28   :  { %p623_p4 = por %p622_p3, %p621_p2 }
  0x2a   :  { %p624_p5 = pnand %p623_p4, %p617_p1 }
  0x2c   :  { %627 = shalt.err (!%p624_p5)
}
  0x2d   :  { %s662_s0 = smov 128   ;;  %s663_s12 = smov 8  }
  0x2e   :  { %59 = dma.hbm_to_vmem [thread:$0]  %s724_s3, 4096, %s54_s10, [#allocation9], %s662_s0, %s662_s0, %s663_s12  }
  0x2f   :  { %648 = dma.done.wait [#allocation3], 128  }
  0x30   :  { %649 = vsyncadd [#allocation3], 4294967168 }
  0x31   :  { %650 = dma.done.wait [#allocation6], 12288  }
  0x32   :  { %651 = vsyncadd [#allocation6], 4294955008 }
  0x33   :  { %652 = dma.done.wait [#allocation9], 4096  }
  0x34   :  { %653 = vsyncadd [#allocation9], 4294963200  ;;  %v664_v0 = vmov 0.0   ;;  %v109_v1 = vld [vmem:[#allocation5 + $0xf8] sm:$0xff]  ;;  %v108_v2 = vld [vmem:[#allocation5 + $0xf0] sm:$0xff]  ;;  %s665_s19 = smov 1  }
  0x35   :  { %185 = vmatprep.mubr.f32.mxu0 %v664_v0  ;;  %v107_v3 = vld [vmem:[#allocation5 + $0xe8] sm:$0xff]  ;;  %121 = vmatprep.subr.mxu0 %v109_v1  ;;  %v106_v4 = vld [vmem:[#allocation5 + $0xe0] sm:$0xff]  ;;  %v105_v5 = vld [vmem:[#allocation5 + $0xd8] sm:$0xff]  ;;  %vm463_vm0 = vcmask 7168   ;;  %s666_s24 = smov [#allocation10]  }
  0x36   :  { %122 = vmatpush1.msra.mxu0 %v108_v2  ;;  %v104_v6 = vld [vmem:[#allocation5 + $0xd0] sm:$0xff]  ;;  %v103_v7 = vld [vmem:[#allocation5 + $0xc8] sm:$0xff]  ;;  %v102_v8 = vld [vmem:[#allocation5 + $0xc0] sm:$0xff]  ;;  %s486_s25 = sshll.u32 %s666_s24, 4  ;;  %s487_s25 = int_to_ptr.vmem [resolvable:$true] %s486_s25 }
  0x37   :  { %123 = vmatprep.subr.mxu0 %v107_v3  ;;  %v101_v9 = vld [vmem:[#allocation5 + $0xb8] sm:$0xff]  ;;  %v100_v10 = vld [vmem:[#allocation5 + $0xb0] sm:$0xff]  ;;  %v99_v11 = vld [vmem:[#allocation5 + $0xa8] sm:$0xff]  ;;  %s628_s26 = scalar_lea.vmem %s487_s25, 128  ;;  %p633_p7 = scmp.lt.s32.totalorder %s487_s25, %s487_s25 }
  0x38   :  { %124 = vmatpush1.msra.mxu0 %v106_v4  ;;  %v98_v12 = vld [vmem:[#allocation5 + $0xa0] sm:$0xff]  ;;  %v97_v13 = vld [vmem:[#allocation5 + $0x98] sm:$0xff]  ;;  %v96_v14 = vld [vmem:[#allocation5 + $0x90] sm:$0xff]  ;;  %p629_p6 = scmp.ne.s32.totalorder %s487_s25, %s628_s26  ;;  %p634_p8 = scmp.lt.s32.totalorder %s628_s26, %s628_s26 }
  0x39   :  { %125 = vmatprep.subr.mxu0 %v105_v5  ;;  %v225_v15 = vld [vmem:[#allocation7 + $0xf8] sm:$0xff]  ;;  %v224_v16 = vld [vmem:[#allocation7 + $0xf0] sm:$0xff]  ;;  %v223_v17 = vld [vmem:[#allocation7 + $0xe8] sm:$0xff] }
  0x3a   :  { %126 = vmatpush1.msra.mxu0 %v104_v6  ;;  %v95_v18 = vld [vmem:[#allocation5 + $0x88] sm:$0xff]  ;;  %269 = vmatprep.subr.mxu1 %v225_v15  ;;  %v222_v19 = vld [vmem:[#allocation7 + $0xe0] sm:$0xff]  ;;  %v221_v21 = vld [vmem:[#allocation7 + $0xd8] sm:$0xff]  ;;  %p635_p9 = por %p634_p8, %p633_p7 }
  0x3b   :  { %127 = vmatprep.subr.mxu0 %v103_v7  ;;  %v94_v20 = vld [vmem:[#allocation5 + $0x80] sm:$0xff]  ;;  %270 = vmatpush1.msra.mxu1 %v224_v16  ;;  %v93_v22 = vld [vmem:[#allocation5 + $0x78] sm:$0xff]  ;;  %v220_v23 = vld [vmem:[#allocation7 + $0xd0] sm:$0xff] }
  0x3c   :  { %128 = vmatpush1.msra.mxu0 %v102_v8  ;;  %271 = vmatprep.subr.mxu1 %v223_v17  ;;  %v92_v24 = vld [vmem:[#allocation5 + $0x70] sm:$0xff]  ;;  %v219_v25 = vld [vmem:[#allocation7 + $0xc8] sm:$0xff]  ;;  %v218_v27 = vld [vmem:[#allocation7 + $0xc0] sm:$0xff]  ;;  %p636_p10 = pnand %p635_p9, %p629_p6 }
  0x3d   :  { %129 = vmatprep.subr.mxu0 %v101_v9  ;;  %272 = vmatpush1.msra.mxu1 %v222_v19  ;;  %v91_v26 = vld [vmem:[#allocation5 + $0x68] sm:$0xff]  ;;  %v90_v28 = vld [vmem:[#allocation5 + $0x60] sm:$0xff]  ;;  %v217_v29 = vld [vmem:[#allocation7 + $0xb8] sm:$0xff] }
  0x3e   :  { %130 = vmatpush1.msra.mxu0 %v100_v10  ;;  %273 = vmatprep.subr.mxu1 %v221_v21  ;;  %v89_v30 = vld [vmem:[#allocation5 + $0x58] sm:$0xff]  ;;  %v216_v31 = vld [vmem:[#allocation7 + $0xb0] sm:$0xff]  ;;  %v215_v33 = vld [vmem:[#allocation7 + $0xa8] sm:$0xff] }
  0x3f   :  { %131 = vmatprep.subr.mxu0 %v99_v11  ;;  %274 = vmatpush1.msra.mxu1 %v220_v23  ;;  %v88_v32 = vld [vmem:[#allocation5 + $0x50] sm:$0xff]  ;;  %v87_v34 = vld [vmem:[#allocation5 + $0x48] sm:$0xff]  ;;  %v214_v35 = vld [vmem:[#allocation7 + $0xa0] sm:$0xff] }
  0x40   :  { %132 = vmatpush1.msra.mxu0 %v98_v12  ;;  %275 = vmatprep.subr.mxu1 %v219_v25  ;;  %v86_v36 = vld [vmem:[#allocation5 + $0x40] sm:$0xff]  ;;  %v213_v37 = vld [vmem:[#allocation7 + $0x98] sm:$0xff]  ;;  %v212_v39 = vld [vmem:[#allocation7 + $0x90] sm:$0xff] }
  0x41   :  { %133 = vmatprep.subr.mxu0 %v97_v13  ;;  %276 = vmatpush1.msra.mxu1 %v218_v27  ;;  %v85_v38 = vld [vmem:[#allocation5 + $0x38] sm:$0xff]  ;;  %v84_v40 = vld [vmem:[#allocation5 + $0x30] sm:$0xff]  ;;  %v211_v41 = vld [vmem:[#allocation7 + $0x88] sm:$0xff] }
  0x42   :  { %134 = vmatpush1.msra.mxu0 %v96_v14  ;;  %277 = vmatprep.subr.mxu1 %v217_v29  ;;  %v83_v42 = vld [vmem:[#allocation5 + $0x28] sm:$0xff]  ;;  %v210_v43 = vld [vmem:[#allocation7 + $0x80] sm:$0xff]  ;;  %v209_v45 = vld [vmem:[#allocation7 + $0x78] sm:$0xff] }
  0x43   :  { %135 = vmatprep.subr.mxu0 %v95_v18  ;;  %278 = vmatpush1.msra.mxu1 %v216_v31  ;;  %v82_v44 = vld [vmem:[#allocation5 + $0x20] sm:$0xff]  ;;  %v81_v46 = vld [vmem:[#allocation5 + $0x18] sm:$0xff]  ;;  %v208_v47 = vld [vmem:[#allocation7 + $0x70] sm:$0xff] }
  0x44   :  { %136 = vmatpush1.msra.mxu0 %v94_v20  ;;  %279 = vmatprep.subr.mxu1 %v215_v33  ;;  %v80_v48 = vld [vmem:[#allocation5 + $0x10] sm:$0xff]  ;;  %v207_v49 = vld [vmem:[#allocation7 + $0x68] sm:$0xff]  ;;  %v206_v51 = vld [vmem:[#allocation7 + $0x60] sm:$0xff] }
  0x45   :  { %137 = vmatprep.subr.mxu0 %v93_v22  ;;  %280 = vmatpush1.msra.mxu1 %v214_v35  ;;  %v79_v50 = vld [vmem:[#allocation5 + $0x8] sm:$0xff]  ;;  %v78_v52 = vld [vmem:[#allocation5] sm:$0xff]  ;;  %v205_v53 = vld [vmem:[#allocation7 + $0x58] sm:$0xff] }
  0x46   :  { %138 = vmatpush1.msra.mxu0 %v92_v24  ;;  %281 = vmatprep.subr.mxu1 %v213_v37  ;;  %v74_v54 = vld [vmem:[#allocation2] sm:$0xff]  ;;  %v204_v55 = vld [vmem:[#allocation7 + $0x50] sm:$0xff]  ;;  %v203_v56 = vld [vmem:[#allocation7 + $0x48] sm:$0xff] }
  0x47   :  { %139 = vmatprep.subr.mxu0 %v91_v26  ;;  %282 = vmatpush1.msra.mxu1 %v212_v39  ;;  %v202_v57 = vld [vmem:[#allocation7 + $0x40] sm:$0xff]  ;;  %v201_v58 = vld [vmem:[#allocation7 + $0x38] sm:$0xff]  ;;  %v200_v59 = vld [vmem:[#allocation7 + $0x30] sm:$0xff] }
  0x48   :  { %140 = vmatpush1.msra.mxu0 %v90_v28  ;;  %283 = vmatprep.subr.mxu1 %v211_v41  ;;  %v199_v60 = vld [vmem:[#allocation7 + $0x28] sm:$0xff]  ;;  %v198_v61 = vld [vmem:[#allocation7 + $0x20] sm:$0xff]  ;;  %v197_v62 = vld [vmem:[#allocation7 + $0x18] sm:$0xff] }
  0x49   :  { %141 = vmatprep.subr.mxu0 %v89_v30  ;;  %284 = vmatpush1.msra.mxu1 %v210_v43  ;;  %v196_v63 = vld [vmem:[#allocation7 + $0x10] sm:$0xff]  ;;  %v195_v0 = vld [vmem:[#allocation7 + $0x8] sm:$0xff]  ;;  %v194_v1 = vld [vmem:[#allocation7] sm:$0xff] }
  0x4a   :  { %142 = vmatpush1.msra.mxu0 %v88_v32  ;;  %285 = vmatprep.subr.mxu1 %v209_v45  ;;  %v257_v2 = vld [vmem:[#allocation7 + $0x1f8] sm:$0xff]  ;;  %v256_v3 = vld [vmem:[#allocation7 + $0x1f0] sm:$0xff]  ;;  %v255_v4 = vld [vmem:[#allocation7 + $0x1e8] sm:$0xff] }
  0x4b   :  { %143 = vmatprep.subr.mxu0 %v87_v34  ;;  %286 = vmatpush1.msra.mxu1 %v208_v47  ;;  %v254_v5 = vld [vmem:[#allocation7 + $0x1e0] sm:$0xff]  ;;  %v253_v6 = vld [vmem:[#allocation7 + $0x1d8] sm:$0xff]  ;;  %v252_v7 = vld [vmem:[#allocation7 + $0x1d0] sm:$0xff] }
  0x4c   :  { %144 = vmatpush1.msra.mxu0 %v86_v36  ;;  %287 = vmatprep.subr.mxu1 %v207_v49  ;;  %v251_v8 = vld [vmem:[#allocation7 + $0x1c8] sm:$0xff]  ;;  %v250_v9 = vld [vmem:[#allocation7 + $0x1c0] sm:$0xff]  ;;  %v249_v10 = vld [vmem:[#allocation7 + $0x1b8] sm:$0xff] }
  0x4d   :  { %145 = vmatprep.subr.mxu0 %v85_v38  ;;  %288 = vmatpush1.msra.mxu1 %v206_v51  ;;  %v248_v11 = vld [vmem:[#allocation7 + $0x1b0] sm:$0xff]  ;;  %v247_v12 = vld [vmem:[#allocation7 + $0x1a8] sm:$0xff]  ;;  %v246_v13 = vld [vmem:[#allocation7 + $0x1a0] sm:$0xff] }
  0x4e   :  { %146 = vmatpush1.msra.mxu0 %v84_v40  ;;  %289 = vmatprep.subr.mxu1 %v205_v53  ;;  %v245_v14 = vld [vmem:[#allocation7 + $0x198] sm:$0xff]  ;;  %v244_v15 = vld [vmem:[#allocation7 + $0x190] sm:$0xff]  ;;  %v243_v16 = vld [vmem:[#allocation7 + $0x188] sm:$0xff] }
  0x4f   :  { %147 = vmatprep.subr.mxu0 %v83_v42  ;;  %290 = vmatpush1.msra.mxu1 %v204_v55  ;;  %v242_v17 = vld [vmem:[#allocation7 + $0x180] sm:$0xff]  ;;  %v241_v18 = vld [vmem:[#allocation7 + $0x178] sm:$0xff]  ;;  %v240_v19 = vld [vmem:[#allocation7 + $0x170] sm:$0xff] }
  0x50   :  { %148 = vmatpush1.msra.mxu0 %v82_v44  ;;  %291 = vmatprep.subr.mxu1 %v203_v56  ;;  %v239_v20 = vld [vmem:[#allocation7 + $0x168] sm:$0xff]  ;;  %v238_v21 = vld [vmem:[#allocation7 + $0x160] sm:$0xff]  ;;  %v237_v22 = vld [vmem:[#allocation7 + $0x158] sm:$0xff] }
  0x51   :  { %149 = vmatprep.subr.mxu0 %v81_v46  ;;  %292 = vmatpush1.msra.mxu1 %v202_v57  ;;  %v236_v23 = vld [vmem:[#allocation7 + $0x150] sm:$0xff]  ;;  %v235_v24 = vld [vmem:[#allocation7 + $0x148] sm:$0xff]  ;;  %v234_v25 = vld [vmem:[#allocation7 + $0x140] sm:$0xff] }
  0x52   :  { %150 = vmatpush1.msra.mxu0 %v80_v48  ;;  %293 = vmatprep.subr.mxu1 %v201_v58  ;;  %v233_v26 = vld [vmem:[#allocation7 + $0x138] sm:$0xff]  ;;  %v232_v27 = vld [vmem:[#allocation7 + $0x130] sm:$0xff]  ;;  %v231_v28 = vld [vmem:[#allocation7 + $0x128] sm:$0xff]  ;;  %v111_v58 = vlaneseq }
  0x53   :  { %151 = vmatprep.subr.mxu0 %v79_v50  ;;  %294 = vmatpush1.msra.mxu1 %v200_v59  ;;  %v230_v29 = vld [vmem:[#allocation7 + $0x120] sm:$0xff]  ;;  %v229_v30 = vld [vmem:[#allocation7 + $0x118] sm:$0xff]  ;;  %v228_v31 = vld [vmem:[#allocation7 + $0x110] sm:$0xff] }
  0x54   :  { %152 = vmatpush1.msra.mxu0 %v78_v52  ;;  %295 = vmatprep.subr.mxu1 %v199_v60  ;;  %v227_v32 = vld [vmem:[#allocation7 + $0x108] sm:$0xff]  ;;  %v226_v33 = vld [vmem:[#allocation7 + $0x100] sm:$0xff]  ;;  %v373_v34 = vld [vmem:[#allocation8 + $0xf8] sm:$0xff]  ;;  %v112_v59 = vshrl.u32 %v111_v58, 7 }
  0x55   :  { %186 = vmatmul.mubr.f32.vlgmr.msra.gmra.mxu0 %v74_v54  ;;  %296 = vmatpush1.msra.mxu1 %v198_v61  ;;  %v357_v35 = vld [vmem:[#allocation8 + $0x78] sm:$0xff]  ;;  %v372_v36 = vld [vmem:[#allocation8 + $0xf0] sm:$0xff]  ;;  %v371_v38 = vld [vmem:[#allocation8 + $0xe8] sm:$0xff] }
  0x56   :  { %297 = vmatprep.subr.mxu1 %v197_v62  ;;  %498 = vmatprep.subr.mxu0 %v373_v34  ;;  %v356_v37 = vld [vmem:[#allocation8 + $0x70] sm:$0xff]  ;;  %v355_v39 = vld [vmem:[#allocation8 + $0x68] sm:$0xff]  ;;  %v370_v40 = vld [vmem:[#allocation8 + $0xe0] sm:$0xff]  ;;  %v113_v60 = vsub.s32 0, %v112_v59  ;;  %v117_v62 = vsub.s32 1, %v112_v59 }
  0x57   :  { %298 = vmatpush1.msra.mxu1 %v196_v63  ;;  %499 = vmatpush3.msra.mxu0 %v357_v35  ;;  %v354_v41 = vld [vmem:[#allocation8 + $0x60] sm:$0xff]  ;;  %v369_v42 = vld [vmem:[#allocation8 + $0xd8] sm:$0xff]  ;;  %v368_v44 = vld [vmem:[#allocation8 + $0xd0] sm:$0xff] }
  0x58   :  { %299 = vmatprep.subr.mxu1 %v195_v0  ;;  %500 = vmatprep.subr.mxu0 %v372_v36  ;;  %v353_v43 = vld [vmem:[#allocation8 + $0x58] sm:$0xff]  ;;  %v352_v45 = vld [vmem:[#allocation8 + $0x50] sm:$0xff]  ;;  %v367_v46 = vld [vmem:[#allocation8 + $0xc8] sm:$0xff] }
  0x59   :  { %300 = vmatpush1.msra.mxu1 %v194_v1  ;;  %501 = vmatpush3.msra.mxu0 %v356_v37  ;;  %v351_v47 = vld [vmem:[#allocation8 + $0x48] sm:$0xff]  ;;  %v366_v48 = vld [vmem:[#allocation8 + $0xc0] sm:$0xff]  ;;  %v365_v50 = vld [vmem:[#allocation8 + $0xb8] sm:$0xff] }
  0x5a   :  { %301 = vmatprep.subr.mxu1 %v257_v2  ;;  %502 = vmatprep.subr.mxu0 %v371_v38  ;;  %v350_v49 = vld [vmem:[#allocation8 + $0x40] sm:$0xff]  ;;  %v349_v51 = vld [vmem:[#allocation8 + $0x38] sm:$0xff]  ;;  %v364_v52 = vld [vmem:[#allocation8 + $0xb0] sm:$0xff] }
  0x5b   :  { %302 = vmatpush2.msra.mxu1 %v256_v3  ;;  %503 = vmatpush3.msra.mxu0 %v355_v39  ;;  %v348_v53 = vld [vmem:[#allocation8 + $0x30] sm:$0xff]  ;;  %v363_v54 = vld [vmem:[#allocation8 + $0xa8] sm:$0xff]  ;;  %v362_v56 = vld [vmem:[#allocation8 + $0xa0] sm:$0xff] }
  0x5c   :  { %303 = vmatprep.subr.mxu1 %v255_v4  ;;  %504 = vmatprep.subr.mxu0 %v370_v40  ;;  %v347_v55 = vld [vmem:[#allocation8 + $0x28] sm:$0xff]  ;;  %v346_v57 = vld [vmem:[#allocation8 + $0x20] sm:$0xff]  ;;  %v75_v61 = vld [vmem:[%s725_s4] sm:$0x3] }
  0x5d   :  { %304 = vmatpush2.msra.mxu1 %v254_v5  ;;  %505 = vmatpush3.msra.mxu0 %v354_v41  ;;  %v114_v63 = vrot.slane %v75_v61, %v113_v60  ;;  %v118_v0 = vrot.slane %v75_v61, %v117_v62 }
  0x5e   :  { %305 = vmatprep.subr.mxu1 %v253_v6  ;;  %506 = vmatprep.subr.mxu0 %v369_v42 }
  0x5f   :  { %306 = vmatpush2.msra.mxu1 %v252_v7  ;;  %507 = vmatpush3.msra.mxu0 %v353_v43  ;;  %v361_v7 = vld [vmem:[#allocation8 + $0x98] sm:$0xff] }
  0x60   :  { %307 = vmatprep.subr.mxu1 %v251_v8  ;;  %508 = vmatprep.subr.mxu0 %v368_v44  ;;  %v345_v8 = vld [vmem:[#allocation8 + $0x18] sm:$0xff] }
  0x61   :  { %308 = vmatpush2.msra.mxu1 %v250_v9  ;;  %509 = vmatpush3.msra.mxu0 %v352_v45  ;;  %v360_v9 = vld [vmem:[#allocation8 + $0x90] sm:$0xff] }
  0x62   :  { %309 = vmatprep.subr.mxu1 %v249_v10  ;;  %510 = vmatprep.subr.mxu0 %v367_v46  ;;  %v344_v10 = vld [vmem:[#allocation8 + $0x10] sm:$0xff] }
  0x63   :  { %310 = vmatpush2.msra.mxu1 %v248_v11  ;;  %511 = vmatpush3.msra.mxu0 %v351_v47  ;;  %v359_v11 = vld [vmem:[#allocation8 + $0x88] sm:$0xff] }
  0x64   :  { %311 = vmatprep.subr.mxu1 %v247_v12  ;;  %512 = vmatprep.subr.mxu0 %v366_v48  ;;  %v343_v12 = vld [vmem:[#allocation8 + $0x8] sm:$0xff] }
  0x65   :  { %312 = vmatpush2.msra.mxu1 %v246_v13  ;;  %513 = vmatpush3.msra.mxu0 %v350_v49  ;;  %v358_v13 = vld [vmem:[#allocation8 + $0x80] sm:$0xff] }
  0x66   :  { %313 = vmatprep.subr.mxu1 %v245_v14  ;;  %514 = vmatprep.subr.mxu0 %v365_v50  ;;  %v342_v14 = vld [vmem:[#allocation8] sm:$0xff] }
  0x67   :  { %314 = vmatpush2.msra.mxu1 %v244_v15  ;;  %515 = vmatpush3.msra.mxu0 %v349_v51  ;;  %v76_v15 = vld [vmem:[%s725_s4 + $0x2] sm:$0x3] }
  0x68   :  { %315 = vmatprep.subr.mxu1 %v243_v16  ;;  %516 = vmatprep.subr.mxu0 %v364_v52  ;;  %v262_v16 = vrot.slane %v76_v15, %v113_v60 }
  0x69   :  { %316 = vmatpush2.msra.mxu1 %v242_v17  ;;  %517 = vmatpush3.msra.mxu0 %v348_v53  ;;  %v266_v17 = vrot.slane %v76_v15, %v117_v62 }
  0x6a   :  { %317 = vmatprep.subr.mxu1 %v241_v18  ;;  %518 = vmatprep.subr.mxu0 %v363_v54 }
  0x6b   :  { %318 = vmatpush2.msra.mxu1 %v240_v19  ;;  %519 = vmatpush3.msra.mxu0 %v347_v55 }
  0x6c   :  { %319 = vmatprep.subr.mxu1 %v239_v20  ;;  %520 = vmatprep.subr.mxu0 %v362_v56 }
  0x6d   :  { %320 = vmatpush2.msra.mxu1 %v238_v21  ;;  %521 = vmatpush3.msra.mxu0 %v346_v57 }
  0x6e   :  { %321 = vmatprep.subr.mxu1 %v237_v22  ;;  %522 = vmatprep.subr.mxu0 %v361_v7 }
  0x6f   :  { %322 = vmatpush2.msra.mxu1 %v236_v23  ;;  %523 = vmatpush3.msra.mxu0 %v345_v8 }
  0x70   :  { %323 = vmatprep.subr.mxu1 %v235_v24  ;;  %524 = vmatprep.subr.mxu0 %v360_v9 }
  0x71   :  { %324 = vmatpush2.msra.mxu1 %v234_v25  ;;  %525 = vmatpush3.msra.mxu0 %v344_v10  ;;  %v497_v25 = vld [vmem:[%s725_s4 + $0x4] ss:$0 sm:$0xff] }
  0x72   :  { %325 = vmatprep.subr.mxu1 %v233_v26  ;;  %526 = vmatprep.subr.mxu0 %v359_v11 }
  0x73   :  { %326 = vmatpush2.msra.mxu1 %v232_v27  ;;  %527 = vmatpush3.msra.mxu0 %v343_v12 }
  0x74   :  { %327 = vmatprep.subr.mxu1 %v231_v28  ;;  %528 = vmatprep.subr.mxu0 %v358_v13 }
  0x75   :  { %328 = vmatpush2.msra.mxu1 %v230_v29  ;;  %529 = vmatpush3.msra.mxu0 %v342_v14 }
  0x76   :  { %329 = vmatprep.subr.mxu1 %v229_v30 }
  0x77   :  { %330 = vmatpush2.msra.mxu1 %v228_v31 }
  0x78   :  { %331 = vmatprep.subr.mxu1 %v227_v32 }
  0x79   :  { %332 = vmatpush2.msra.mxu1 %v226_v33 }
 0x115   :  { %v187_v1 = vpop.f32.mrf.mxu0 }
 0x116   :  { %v188_v2 = vadd.f32 %v187_v1, %v114_v63 }
 0x117   :  { %v189_v3 = vpop.f32.mrf.mxu0 }
 0x118   :  { %v190_v4 = vadd.f32 %v189_v3, %v118_v0  ;;  %v192_v6 = vmax.f32 %v188_v2, 0.0 }
 0x11a   :  { %v193_v5 = vmax.f32 %v190_v4, 0.0 }
 0x11c   :  { %333 = vmatprep.mubr.f32.mxu1 %v193_v5 }
 0x11d   :  { %334 = vmatmul.mubr.f32.vlgmr.msra.gmra.mxu1 %v192_v6 }
 0x1dd   :  { %v335_v18 = vpop.f32.mrf.mxu1 }
 0x1de   :  { %v336_v19 = vadd.f32 %v335_v18, %v262_v16 }
 0x1df   :  { %v337_v20 = vpop.f32.mrf.mxu1 }
 0x1e0   :  { %v338_v21 = vadd.f32 %v337_v20, %v266_v17  ;;  %v340_v23 = vmax.f32 %v336_v19, 0.0 }
 0x1e2   :  { %v341_v22 = vmax.f32 %v338_v21, 0.0 }
 0x1e4   :  { %444 = vmatprep.mubr.f32.mxu0 %v341_v22 }
 0x1e5   :  { %445 = vmatmul.mubr.f32.vlgmr.msra.gmra.mxu0 %v340_v23 }
 0x2a5   :  { %v530_v24 = vpop.f32.mrf.mxu0 }
 0x2a7   :  { %v531_v26 = vpop.f32.mrf.mxu0 }
 0x2a8   :  { %v532_v27 = vadd.f32 %v531_v26, %v530_v24 }
 0x2aa   :  { %v447_v28 = vadd.f32 %v532_v27, %v497_v25 }
 0x2ac   :  { %460 = vrot.lane.b32.xlu0 %v447_v28, %s665_s19 }
 0x2cb   :  { %450 = vadd.xlane.f32.xlu0 %v447_v28 }
 0x31e   :  { %v461_v29 = vpop.permute.xlu0 %460 }
 0x31f   :  { %v464_v30 = vsel %vm463_vm0, %v461_v29, 0.0 }
 0x320   :  { %465 = vadd.xlane.f32.xlu1 %v464_v30 }
 0x354   :  { %v451_v31 = vpop.xlane.xlu0 %450 }
 0x355   :  { %v452_v32 = vrot.slane %v451_v31, 4 }
 0x357   :  { %v453_v33 = vadd.f32 %v452_v32, %v451_v31 }
 0x359   :  { %v454_v34 = vrot.slane %v453_v33, 2 }
 0x35b   :  { %v455_v35 = vadd.f32 %v454_v34, %v453_v33 }
 0x35d   :  { %v456_v36 = vrot.slane %v455_v35, 1 }
 0x35f   :  { %v457_v37 = vadd.f32 %v456_v36, %v455_v35 }
 0x361   :  { %533 = vpush %v457_v37 }
 0x392   :  { %s534_s4 = spop %533 }
 0x3a9   :  { %v466_v38 = vpop.xlane.xlu1 %465 }
 0x3aa   :  { %v467_v39 = vrot.slane %v466_v38, 4 }
 0x3ac   :  { %v468_v40 = vadd.f32 %v467_v39, %v466_v38 }
 0x3ae   :  { %v469_v41 = vrot.slane %v468_v40, 2 }
 0x3b0   :  { %v470_v42 = vadd.f32 %v469_v41, %v468_v40 }
 0x3b2   :  { %v471_v43 = vrot.slane %v470_v42, 1 }
 0x3b4   :  { %v472_v44 = vadd.f32 %v471_v43, %v470_v42 }
 0x3b6   :  { %535 = vpush %v472_v44 }
 0x3e7   :  { %s536_s20 = spop %535 }
 0x3e8   :  { %s474_s21 = smul.f32 128.0, %s536_s20 }
 0x3ea   :  { %s475_s22 = ssub.f32 %s534_s4, %s474_s21 }
 0x3ec   :  { %s476_s23 = smul.f32 0.025, %s475_s22 }
 0x3ee   :  { %v477_v45 = vstv %s476_s23 }
 0x3ef   :  { %v478_v46 = vsub.f32 %v447_v28, %v477_v45 }
 0x3f1   :  { %479 = vst [vmem:[#allocation10] sm:$0xff] %v478_v46 }
 0x3f2   :  { %639 = shalt.err (!%p636_p10)
}
 0x3f3   :  { %489 = dma.vmem_to_hbm [thread:$0]  %s487_s25, 128, %s726_s5, [#allocation4]  }
 0x3f4   :  { %654 = dma.done.wait [#allocation4], 128  }
 0x3f5   :  { %655 = vsyncadd [#allocation4], 4294967168 }
 0x3f6   :  { %493 = vsyncpa [#allocation3], 1 }
 0x3f7   :  { %494 = vsyncpa [#allocation6], 1 }
 0x3f8   :  { %495 = vsyncpa [#allocation9], 1 }
 0x3f9   :  { %496 = vsyncpa [#allocation4], 1 }

</bundles_post_ra>
